<compile_context>
chip_gen: v7x
topology: tpu7x:2x2x1
jax: 0.10.0
libtpu: 0.0.40
codegen_flags: <defaults>
</compile_context>

<pallas_src>
import jax
import jax.numpy as jnp
from jax import lax
from jax.experimental import pallas as pl
from jax.experimental.pallas import tpu as pltpu

# -------- small synthetic GPT-2-style config (gpt2-medium downsized) ---------
N_LAYER = 12          # segment 1 holds transformer.h[:12]
N_EMBD = 64
N_HEAD = 4
HEAD_DIM = N_EMBD // N_HEAD
VOCAB = 128
N_POS = 32
LN_EPS = 1e-5

_WEIGHT_ORDER = ["ln1_g", "ln1_b", "w_qkv", "b_qkv", "w_proj", "b_proj",
                 "ln2_g", "ln2_b", "w_fc", "b_fc", "w_fc2", "b_fc2"]
_BF16_WEIGHTS = {"w_qkv", "w_proj", "w_fc", "w_fc2"}   # bf16 matmul operands (MXU-native)


def _layernorm(x, g, b):
    mu = jnp.mean(x, axis=-1, keepdims=True)
    var = jnp.mean((x - mu) ** 2, axis=-1, keepdims=True)
    return (x - mu) * lax.rsqrt(var + LN_EPS) * g + b


def _gelu_new(x):
    # GPT-2 "gelu_new" (tanh approximation)
    return 0.5 * x * (1.0 + jnp.tanh(jnp.sqrt(2.0 / jnp.pi) * (x + 0.044715 * x ** 3)))


def gpt2_stack_kernel(h_ref, padb_ref,
                      ln1g_ref, ln1b_ref, wqkv_ref, bqkv_ref, wproj_ref, bproj_ref,
                      ln2g_ref, ln2b_ref, wfc_ref, bfc_ref, wfc2_ref, bfc2_ref,
                      o_ref):
    B, S, D = o_ref.shape
    BS = B * S
    H, Hd = N_HEAD, HEAD_DIM
    NEG = jnp.float32(-1e30)          # large-finite mask value (never stacks to -inf)
    scale = 1.0 / jnp.sqrt(jnp.float32(Hd))

    # ---- combined causal + padding additive bias, built in-kernel (no HBM tensor) ----
    row = lax.broadcasted_iota(jnp.int32, (S, S), 0)
    col = lax.broadcasted_iota(jnp.int32, (S, S), 1)
    causal = col <= row                                            # (S, S) bool
    pad = padb_ref[...]                                            # (B, S): 0 / -1e30
    combined = jnp.where(causal[None, :, :], pad[:, None, :], NEG)  # (B, S, S)
    bias_n = jnp.concatenate([combined] * H, axis=0)               # (H*B, S, S), n = h*B + b

    def layer(l, x):
        # ---------------- attention ----------------
        residual = x
        xn = _layernorm(x, ln1g_ref[l], ln1b_ref[l])
        qkv = (jnp.dot(xn.astype(jnp.bfloat16), wqkv_ref[l],
                       preferred_element_type=jnp.float32) + bqkv_ref[l])   # (BS, 3D) f32
        qkv_b = qkv.astype(jnp.bfloat16)

        def split_heads(off):
            # static 16-lane slices -> (H*B, S, Hd), merged batch axis n = h*B + b
            return jnp.concatenate(
                [qkv_b[:, off + h * Hd: off + (h + 1) * Hd].reshape(B, S, Hd)
                 for h in range(H)], axis=0)

        qh = split_heads(0)
        kh = split_heads(D)
        vh = split_heads(2 * D)

        s = jnp.einsum("nqd,nkd->nqk", qh, kh,
                       preferred_element_type=jnp.float32) * scale
        s = s + bias_n
        s = s - jnp.max(s, axis=-1, keepdims=True)
        e = jnp.exp(s)
        p = e / jnp.sum(e, axis=-1, keepdims=True)                  # exact divide (f32)
        ctx = jnp.einsum("nqk,nkd->nqd", p.astype(jnp.bfloat16), vh,
                         preferred_element_type=jnp.float32)        # (H*B, S, Hd) f32
        attn = jnp.concatenate(
            [ctx[h * B:(h + 1) * B].reshape(BS, Hd) for h in range(H)], axis=-1)
        attn = (jnp.dot(attn.astype(jnp.bfloat16), wproj_ref[l],
                        preferred_element_type=jnp.float32) + bproj_ref[l])
        x = attn + residual

        # ---------------- MLP ----------------
        residual = x
        xn2 = _layernorm(x, ln2g_ref[l], ln2b_ref[l])
        f = (jnp.dot(xn2.astype(jnp.bfloat16), wfc_ref[l],
                     preferred_element_type=jnp.float32) + bfc_ref[l])
        f = _gelu_new(f)
        f = (jnp.dot(f.astype(jnp.bfloat16), wfc2_ref[l],
                     preferred_element_type=jnp.float32) + bfc2_ref[l])
        return f + residual

    x0 = h_ref[...].reshape(BS, D)                     # one input DMA, then resident
    xN = lax.fori_loop(0, N_LAYER, layer, x0)
    o_ref[...] = xN.reshape(B, S, D)                   # single HBM writeback


def gpt2_blocks_fused(hidden, pad_bias, blocks):
    """Run all N_LAYER transformer blocks in ONE pallas_call (no grid; in-kernel loop)."""
    B, S, D = hidden.shape
    weights = []
    for k in _WEIGHT_ORDER:
        w = blocks[k]
        weights.append(w.astype(jnp.bfloat16) if k in _BF16_WEIGHTS else w)

    args = [hidden, pad_bias] + weights
    vmem = lambda: pl.BlockSpec(memory_space=pltpu.MemorySpace.VMEM)

    return pl.pallas_call(
        gpt2_stack_kernel,
        out_shape=jax.ShapeDtypeStruct((B, S, D), jnp.float32),
        in_specs=[vmem() for _ in args],
        out_specs=vmem(),
    )(*args)


def gpt2_segment1_forward(params, input_ids, attention_mask=None):
    B, S = input_ids.shape
    pos = jnp.arange(S, dtype=jnp.int32)
    # Embedding gathers kept in plain JAX (no clean tiny-Pallas equivalent for gather here).
    hidden = (jnp.take(params["wte"], input_ids, axis=0)
              + jnp.take(params["wpe"], pos, axis=0)[None, :, :]).astype(jnp.float32)
    # dropout (eval mode) = identity

    if attention_mask is not None:
        am = attention_mask.reshape(B, -1).astype(jnp.float32)
        # HF-style returned additive mask (matches the PyTorch module's 2nd output)
        attn_bias_4d = ((1.0 - am) * jnp.finfo(jnp.float32).min)[:, None, None, :]
        pad_bias = (1.0 - am) * jnp.float32(-1e30)     # safe finite value used in-kernel
    else:
        attn_bias_4d = None
        pad_bias = jnp.zeros((B, S), jnp.float32)

    hidden = gpt2_blocks_fused(hidden, pad_bias, params["blocks"])
    return hidden, attn_bias_4d


def init_params(key):
    keys = jax.random.split(key, 6)

    def nrm(k, shape, scale=0.02):
        return scale * jax.random.normal(k, shape, jnp.float32)

    # Per-layer weights stacked along a leading layer axis for the fused kernel.
    params = {
        "wte": nrm(keys[0], (VOCAB, N_EMBD)),
        "wpe": nrm(keys[1], (N_POS, N_EMBD), 0.01),
        "blocks": {
            "ln1_g": jnp.ones((N_LAYER, 1, N_EMBD), jnp.float32),
            "ln1_b": jnp.zeros((N_LAYER, 1, N_EMBD), jnp.float32),
            "w_qkv": nrm(keys[2], (N_LAYER, N_EMBD, 3 * N_EMBD)),
            "b_qkv": jnp.zeros((N_LAYER, 1, 3 * N_EMBD), jnp.float32),
            "w_proj": nrm(keys[3], (N_LAYER, N_EMBD, N_EMBD)),
            "b_proj": jnp.zeros((N_LAYER, 1, N_EMBD), jnp.float32),
            "ln2_g": jnp.ones((N_LAYER, 1, N_EMBD), jnp.float32),
            "ln2_b": jnp.zeros((N_LAYER, 1, N_EMBD), jnp.float32),
            "w_fc": nrm(keys[4], (N_LAYER, N_EMBD, 4 * N_EMBD)),
            "b_fc": jnp.zeros((N_LAYER, 1, 4 * N_EMBD), jnp.float32),
            "w_fc2": nrm(keys[5], (N_LAYER, 4 * N_EMBD, N_EMBD)),
            "b_fc2": jnp.zeros((N_LAYER, 1, N_EMBD), jnp.float32),
        },
    }
    return params


if __name__ == "__main__":
    B, S = 2, 8
    key = jax.random.PRNGKey(0)
    pkey, ikey = jax.random.split(key)
    params = init_params(pkey)

    input_ids = jax.random.randint(ikey, (B, S), 0, VOCAB, dtype=jnp.int32)
    attention_mask = jnp.ones((B, S), jnp.int32).at[1, -2:].set(0)  # pad last 2 tokens of row 1

    fwd = jax.jit(gpt2_segment1_forward)
    hidden_states, attn_mask_out = fwd(params, input_ids, attention_mask)
    jax.block_until_ready(hidden_states)
    jax.block_until_ready(attn_mask_out)

    assert hidden_states.shape == (B, S, N_EMBD)
    assert attn_mask_out.shape == (B, 1, 1, S)
    assert bool(jnp.all(jnp.isfinite(hidden_states)))
    print("KERNEL_OK")
</pallas_src>

<mosaic_0001>
module attributes {stable_mosaic.version = 11 : i64} {
  func.func @gpt2_stack_kernel(%arg0: memref<2x8x64xf32, #tpu.memory_space<vmem>>, %arg1: memref<2x8xf32, #tpu.memory_space<vmem>>, %arg2: memref<12x1x64xf32, #tpu.memory_space<vmem>>, %arg3: memref<12x1x64xf32, #tpu.memory_space<vmem>>, %arg4: memref<12x64x192xbf16, #tpu.memory_space<vmem>>, %arg5: memref<12x1x192xf32, #tpu.memory_space<vmem>>, %arg6: memref<12x64x64xbf16, #tpu.memory_space<vmem>>, %arg7: memref<12x1x64xf32, #tpu.memory_space<vmem>>, %arg8: memref<12x1x64xf32, #tpu.memory_space<vmem>>, %arg9: memref<12x1x64xf32, #tpu.memory_space<vmem>>, %arg10: memref<12x64x256xbf16, #tpu.memory_space<vmem>>, %arg11: memref<12x1x256xf32, #tpu.memory_space<vmem>>, %arg12: memref<12x256x64xbf16, #tpu.memory_space<vmem>>, %arg13: memref<12x1x64xf32, #tpu.memory_space<vmem>>, %arg14: memref<2x8x64xf32, #tpu.memory_space<vmem>>) attributes {dimension_semantics = [], scalar_prefetch = 0 : i64, scratch_operands = 0 : i64, tpu.core_type = #tpu.core_type<tc>} {
    %cst = arith.constant 1.600000e+01 : f32
    %0 = math.sqrt %cst : f32
    %cst_0 = arith.constant 1.000000e+00 : f32
    %1 = arith.divf %cst_0, %0 : f32
    %2 = tpu.iota {dimensions = array<i32: 0>} : vector<8x8xi32>
    %3 = tpu.iota {dimensions = array<i32: 1>} : vector<8x8xi32>
    %4 = arith.cmpi sle, %3, %2 : vector<8x8xi32>
    %c0 = arith.constant 0 : index
    %c0_1 = arith.constant 0 : index
    %5 = vector.load %arg1[%c0, %c0_1] : memref<2x8xf32, #tpu.memory_space<vmem>>, vector<2x8xf32>
    %6 = vector.shape_cast %4 : vector<8x8xi1> to vector<1x8x8xi1>
    %7 = vector.shape_cast %5 : vector<2x8xf32> to vector<2x1x8xf32>
    %cst_2 = arith.constant -1.000000e+30 : f32
    %8 = vector.shape_cast %6 : vector<1x8x8xi1> to vector<1x8x8xi1>
    %9 = vector.broadcast %8 : vector<1x8x8xi1> to vector<2x8x8xi1>
    %10 = vector.shape_cast %7 : vector<2x1x8xf32> to vector<2x1x8xf32>
    %11 = vector.broadcast %10 : vector<2x1x8xf32> to vector<2x8x8xf32>
    %12 = vector.broadcast %cst_2 : f32 to vector<2x8x8xf32>
    %13 = arith.select %9, %11, %12 : vector<2x8x8xi1>, vector<2x8x8xf32>
    %14 = tpu.concatenate %13, %13, %13, %13 in 0 : vector<2x8x8xf32>, vector<2x8x8xf32>, vector<2x8x8xf32>, vector<2x8x8xf32> -> vector<8x8x8xf32>
    %c0_3 = arith.constant 0 : index
    %c0_4 = arith.constant 0 : index
    %c0_5 = arith.constant 0 : index
    %15 = vector.load %arg0[%c0_3, %c0_4, %c0_5] : memref<2x8x64xf32, #tpu.memory_space<vmem>>, vector<2x8x64xf32>
    %16 = vector.shape_cast %15 : vector<2x8x64xf32> to vector<16x64xf32>
    %c0_i32 = arith.constant 0 : i32
    %c12_i32 = arith.constant 12 : i32
    %17 = arith.addi %c0_i32, %c12_i32 : i32
    %c1_i32 = arith.constant 1 : i32
    %18 = scf.for %arg15 = %c0_i32 to %17 step %c1_i32 iter_args(%arg16 = %16) -> (vector<16x64xf32>)  : i32 {
      %21 = arith.index_cast %arg15 : i32 to index
      %c0_10 = arith.constant 0 : index
      %c0_11 = arith.constant 0 : index
      %22 = vector.load %arg2[%21, %c0_10, %c0_11] : memref<12x1x64xf32, #tpu.memory_space<vmem>>, vector<1x1x64xf32>
      %23 = vector.shape_cast %22 : vector<1x1x64xf32> to vector<1x64xf32>
      %24 = arith.index_cast %arg15 : i32 to index
      %c0_12 = arith.constant 0 : index
      %c0_13 = arith.constant 0 : index
      %25 = vector.load %arg3[%24, %c0_12, %c0_13] : memref<12x1x64xf32, #tpu.memory_space<vmem>>, vector<1x1x64xf32>
      %26 = vector.shape_cast %25 : vector<1x1x64xf32> to vector<1x64xf32>
      %cst_14 = arith.constant dense<0.000000e+00> : vector<16xf32>
      %27 = vector.multi_reduction <add>, %arg16, %cst_14 [1] : vector<16x64xf32> to vector<16xf32>
      %28 = vector.shape_cast %27 : vector<16xf32> to vector<16x1xf32>
      %cst_15 = arith.constant 6.400000e+01 : f32
      %29 = vector.broadcast %cst_15 : f32 to vector<16x1xf32>
      %30 = arith.divf %28, %29 : vector<16x1xf32>
      %31 = vector.broadcast %30 : vector<16x1xf32> to vector<16x64xf32>
      %32 = arith.subf %arg16, %31 : vector<16x64xf32>
      %33 = arith.mulf %32, %32 : vector<16x64xf32>
      %cst_16 = arith.constant dense<0.000000e+00> : vector<16xf32>
      %34 = vector.multi_reduction <add>, %33, %cst_16 [1] : vector<16x64xf32> to vector<16xf32>
      %35 = vector.shape_cast %34 : vector<16xf32> to vector<16x1xf32>
      %cst_17 = arith.constant 6.400000e+01 : f32
      %36 = vector.broadcast %cst_17 : f32 to vector<16x1xf32>
      %37 = arith.divf %35, %36 : vector<16x1xf32>
      %38 = vector.broadcast %30 : vector<16x1xf32> to vector<16x64xf32>
      %39 = arith.subf %arg16, %38 : vector<16x64xf32>
      %cst_18 = arith.constant 9.99999974E-6 : f32
      %40 = vector.broadcast %cst_18 : f32 to vector<16x1xf32>
      %41 = arith.addf %37, %40 : vector<16x1xf32>
      %42 = math.rsqrt %41 : vector<16x1xf32>
      %43 = vector.broadcast %42 : vector<16x1xf32> to vector<16x64xf32>
      %44 = arith.mulf %39, %43 : vector<16x64xf32>
      %45 = vector.broadcast %23 : vector<1x64xf32> to vector<16x64xf32>
      %46 = arith.mulf %44, %45 : vector<16x64xf32>
      %47 = vector.broadcast %26 : vector<1x64xf32> to vector<16x64xf32>
      %48 = arith.addf %46, %47 : vector<16x64xf32>
      %49 = arith.truncf %48 : vector<16x64xf32> to vector<16x64xbf16>
      %50 = arith.index_cast %arg15 : i32 to index
      %c0_19 = arith.constant 0 : index
      %c0_20 = arith.constant 0 : index
      %51 = vector.load %arg4[%50, %c0_19, %c0_20] : memref<12x64x192xbf16, #tpu.memory_space<vmem>>, vector<1x64x192xbf16>
      %52 = vector.shape_cast %51 : vector<1x64x192xbf16> to vector<64x192xbf16>
      %cst_21 = arith.constant dense<0.000000e+00> : vector<16x192xf32>
      %53 = tpu.matmul %49, %52, %cst_21 {dimension_numbers = #tpu.dot_dimension_numbers<[1], [0], [0], [1], [0, 0, 1, 1], [], []>} : vector<16x64xbf16>, vector<64x192xbf16>, vector<16x192xf32> -> vector<16x192xf32>
      %54 = arith.index_cast %arg15 : i32 to index
      %c0_22 = arith.constant 0 : index
      %c0_23 = arith.constant 0 : index
      %55 = vector.load %arg5[%54, %c0_22, %c0_23] : memref<12x1x192xf32, #tpu.memory_space<vmem>>, vector<1x1x192xf32>
      %56 = vector.shape_cast %55 : vector<1x1x192xf32> to vector<1x192xf32>
      %57 = vector.broadcast %56 : vector<1x192xf32> to vector<16x192xf32>
      %58 = arith.addf %53, %57 : vector<16x192xf32>
      %59 = arith.truncf %58 : vector<16x192xf32> to vector<16x192xbf16>
      %60 = vector.extract_strided_slice %59 {offsets = [0, 0], sizes = [16, 16], strides = [1, 1]} : vector<16x192xbf16> to vector<16x16xbf16>
      %61 = vector.shape_cast %60 : vector<16x16xbf16> to vector<2x8x16xbf16>
      %62 = vector.extract_strided_slice %59 {offsets = [0, 16], sizes = [16, 16], strides = [1, 1]} : vector<16x192xbf16> to vector<16x16xbf16>
      %63 = vector.shape_cast %62 : vector<16x16xbf16> to vector<2x8x16xbf16>
      %64 = vector.extract_strided_slice %59 {offsets = [0, 32], sizes = [16, 16], strides = [1, 1]} : vector<16x192xbf16> to vector<16x16xbf16>
      %65 = vector.shape_cast %64 : vector<16x16xbf16> to vector<2x8x16xbf16>
      %66 = vector.extract_strided_slice %59 {offsets = [0, 48], sizes = [16, 16], strides = [1, 1]} : vector<16x192xbf16> to vector<16x16xbf16>
      %67 = vector.shape_cast %66 : vector<16x16xbf16> to vector<2x8x16xbf16>
      %68 = tpu.concatenate %61, %63, %65, %67 in 0 : vector<2x8x16xbf16>, vector<2x8x16xbf16>, vector<2x8x16xbf16>, vector<2x8x16xbf16> -> vector<8x8x16xbf16>
      %69 = vector.extract_strided_slice %59 {offsets = [0, 64], sizes = [16, 16], strides = [1, 1]} : vector<16x192xbf16> to vector<16x16xbf16>
      %70 = vector.shape_cast %69 : vector<16x16xbf16> to vector<2x8x16xbf16>
      %71 = vector.extract_strided_slice %59 {offsets = [0, 80], sizes = [16, 16], strides = [1, 1]} : vector<16x192xbf16> to vector<16x16xbf16>
      %72 = vector.shape_cast %71 : vector<16x16xbf16> to vector<2x8x16xbf16>
      %73 = vector.extract_strided_slice %59 {offsets = [0, 96], sizes = [16, 16], strides = [1, 1]} : vector<16x192xbf16> to vector<16x16xbf16>
      %74 = vector.shape_cast %73 : vector<16x16xbf16> to vector<2x8x16xbf16>
      %75 = vector.extract_strided_slice %59 {offsets = [0, 112], sizes = [16, 16], strides = [1, 1]} : vector<16x192xbf16> to vector<16x16xbf16>
      %76 = vector.shape_cast %75 : vector<16x16xbf16> to vector<2x8x16xbf16>
      %77 = tpu.concatenate %70, %72, %74, %76 in 0 : vector<2x8x16xbf16>, vector<2x8x16xbf16>, vector<2x8x16xbf16>, vector<2x8x16xbf16> -> vector<8x8x16xbf16>
      %78 = vector.extract_strided_slice %59 {offsets = [0, 128], sizes = [16, 16], strides = [1, 1]} : vector<16x192xbf16> to vector<16x16xbf16>
      %79 = vector.shape_cast %78 : vector<16x16xbf16> to vector<2x8x16xbf16>
      %80 = vector.extract_strided_slice %59 {offsets = [0, 144], sizes = [16, 16], strides = [1, 1]} : vector<16x192xbf16> to vector<16x16xbf16>
      %81 = vector.shape_cast %80 : vector<16x16xbf16> to vector<2x8x16xbf16>
      %82 = vector.extract_strided_slice %59 {offsets = [0, 160], sizes = [16, 16], strides = [1, 1]} : vector<16x192xbf16> to vector<16x16xbf16>
      %83 = vector.shape_cast %82 : vector<16x16xbf16> to vector<2x8x16xbf16>
      %84 = vector.extract_strided_slice %59 {offsets = [0, 176], sizes = [16, 16], strides = [1, 1]} : vector<16x192xbf16> to vector<16x16xbf16>
      %85 = vector.shape_cast %84 : vector<16x16xbf16> to vector<2x8x16xbf16>
      %86 = tpu.concatenate %79, %81, %83, %85 in 0 : vector<2x8x16xbf16>, vector<2x8x16xbf16>, vector<2x8x16xbf16>, vector<2x8x16xbf16> -> vector<8x8x16xbf16>
      "tpu.trace_start"() <{level = 10 : i32, message = "nqd,nkd->nqk"}> : () -> ()
      %cst_24 = arith.constant dense<0.000000e+00> : vector<8x8x8xf32>
      %87 = tpu.matmul %68, %77, %cst_24 {dimension_numbers = #tpu.dot_dimension_numbers<[2], [2], [1], [1], [0, 0, 0, 1, 1, 1], [0], [0]>} : vector<8x8x16xbf16>, vector<8x8x16xbf16>, vector<8x8x8xf32> -> vector<8x8x8xf32>
      "tpu.trace_stop"() : () -> ()
      %88 = vector.broadcast %1 : f32 to vector<8x8x8xf32>
      %89 = arith.mulf %87, %88 : vector<8x8x8xf32>
      %90 = arith.addf %89, %14 : vector<8x8x8xf32>
      %cst_25 = arith.constant dense<0xFF800000> : vector<8x8xf32>
      %91 = vector.multi_reduction <maximumf>, %90, %cst_25 [2] : vector<8x8x8xf32> to vector<8x8xf32>
      %92 = vector.shape_cast %91 : vector<8x8xf32> to vector<8x8x1xf32>
      %93 = vector.broadcast %92 : vector<8x8x1xf32> to vector<8x8x8xf32>
      %94 = arith.subf %90, %93 : vector<8x8x8xf32>
      %95 = math.exp %94 : vector<8x8x8xf32>
      %cst_26 = arith.constant dense<0.000000e+00> : vector<8x8xf32>
      %96 = vector.multi_reduction <add>, %95, %cst_26 [2] : vector<8x8x8xf32> to vector<8x8xf32>
      %97 = vector.shape_cast %96 : vector<8x8xf32> to vector<8x8x1xf32>
      %98 = vector.broadcast %97 : vector<8x8x1xf32> to vector<8x8x8xf32>
      %99 = arith.divf %95, %98 : vector<8x8x8xf32>
      %100 = arith.truncf %99 : vector<8x8x8xf32> to vector<8x8x8xbf16>
      "tpu.trace_start"() <{level = 10 : i32, message = "nqk,nkd->nqd"}> : () -> ()
      %cst_27 = arith.constant dense<0.000000e+00> : vector<8x8x16xf32>
      %101 = tpu.matmul %100, %86, %cst_27 {dimension_numbers = #tpu.dot_dimension_numbers<[2], [1], [1], [2], [0, 0, 0, 1, 1, 2], [0], [0]>} : vector<8x8x8xbf16>, vector<8x8x16xbf16>, vector<8x8x16xf32> -> vector<8x8x16xf32>
      "tpu.trace_stop"() : () -> ()
      %102 = vector.extract_strided_slice %101 {offsets = [0, 0, 0], sizes = [2, 8, 16], strides = [1, 1, 1]} : vector<8x8x16xf32> to vector<2x8x16xf32>
      %103 = vector.shape_cast %102 : vector<2x8x16xf32> to vector<16x16xf32>
      %104 = vector.extract_strided_slice %101 {offsets = [2, 0, 0], sizes = [2, 8, 16], strides = [1, 1, 1]} : vector<8x8x16xf32> to vector<2x8x16xf32>
      %105 = vector.shape_cast %104 : vector<2x8x16xf32> to vector<16x16xf32>
      %106 = vector.extract_strided_slice %101 {offsets = [4, 0, 0], sizes = [2, 8, 16], strides = [1, 1, 1]} : vector<8x8x16xf32> to vector<2x8x16xf32>
      %107 = vector.shape_cast %106 : vector<2x8x16xf32> to vector<16x16xf32>
      %108 = vector.extract_strided_slice %101 {offsets = [6, 0, 0], sizes = [2, 8, 16], strides = [1, 1, 1]} : vector<8x8x16xf32> to vector<2x8x16xf32>
      %109 = vector.shape_cast %108 : vector<2x8x16xf32> to vector<16x16xf32>
      %110 = tpu.concatenate %103, %105, %107, %109 in 1 : vector<16x16xf32>, vector<16x16xf32>, vector<16x16xf32>, vector<16x16xf32> -> vector<16x64xf32>
      %111 = arith.truncf %110 : vector<16x64xf32> to vector<16x64xbf16>
      %112 = arith.index_cast %arg15 : i32 to index
      %c0_28 = arith.constant 0 : index
      %c0_29 = arith.constant 0 : index
      %113 = vector.load %arg6[%112, %c0_28, %c0_29] : memref<12x64x64xbf16, #tpu.memory_space<vmem>>, vector<1x64x64xbf16>
      %114 = vector.shape_cast %113 : vector<1x64x64xbf16> to vector<64x64xbf16>
      %cst_30 = arith.constant dense<0.000000e+00> : vector<16x64xf32>
      %115 = tpu.matmul %111, %114, %cst_30 {dimension_numbers = #tpu.dot_dimension_numbers<[1], [0], [0], [1], [0, 0, 1, 1], [], []>} : vector<16x64xbf16>, vector<64x64xbf16>, vector<16x64xf32> -> vector<16x64xf32>
      %116 = arith.index_cast %arg15 : i32 to index
      %c0_31 = arith.constant 0 : index
      %c0_32 = arith.constant 0 : index
      %117 = vector.load %arg7[%116, %c0_31, %c0_32] : memref<12x1x64xf32, #tpu.memory_space<vmem>>, vector<1x1x64xf32>
      %118 = vector.shape_cast %117 : vector<1x1x64xf32> to vector<1x64xf32>
      %119 = vector.broadcast %118 : vector<1x64xf32> to vector<16x64xf32>
      %120 = arith.addf %115, %119 : vector<16x64xf32>
      %121 = arith.addf %120, %arg16 : vector<16x64xf32>
      %122 = arith.index_cast %arg15 : i32 to index
      %c0_33 = arith.constant 0 : index
      %c0_34 = arith.constant 0 : index
      %123 = vector.load %arg8[%122, %c0_33, %c0_34] : memref<12x1x64xf32, #tpu.memory_space<vmem>>, vector<1x1x64xf32>
      %124 = vector.shape_cast %123 : vector<1x1x64xf32> to vector<1x64xf32>
      %125 = arith.index_cast %arg15 : i32 to index
      %c0_35 = arith.constant 0 : index
      %c0_36 = arith.constant 0 : index
      %126 = vector.load %arg9[%125, %c0_35, %c0_36] : memref<12x1x64xf32, #tpu.memory_space<vmem>>, vector<1x1x64xf32>
      %127 = vector.shape_cast %126 : vector<1x1x64xf32> to vector<1x64xf32>
      %cst_37 = arith.constant dense<0.000000e+00> : vector<16xf32>
      %128 = vector.multi_reduction <add>, %121, %cst_37 [1] : vector<16x64xf32> to vector<16xf32>
      %129 = vector.shape_cast %128 : vector<16xf32> to vector<16x1xf32>
      %cst_38 = arith.constant 6.400000e+01 : f32
      %130 = vector.broadcast %cst_38 : f32 to vector<16x1xf32>
      %131 = arith.divf %129, %130 : vector<16x1xf32>
      %132 = vector.broadcast %131 : vector<16x1xf32> to vector<16x64xf32>
      %133 = arith.subf %121, %132 : vector<16x64xf32>
      %134 = arith.mulf %133, %133 : vector<16x64xf32>
      %cst_39 = arith.constant dense<0.000000e+00> : vector<16xf32>
      %135 = vector.multi_reduction <add>, %134, %cst_39 [1] : vector<16x64xf32> to vector<16xf32>
      %136 = vector.shape_cast %135 : vector<16xf32> to vector<16x1xf32>
      %cst_40 = arith.constant 6.400000e+01 : f32
      %137 = vector.broadcast %cst_40 : f32 to vector<16x1xf32>
      %138 = arith.divf %136, %137 : vector<16x1xf32>
      %139 = vector.broadcast %131 : vector<16x1xf32> to vector<16x64xf32>
      %140 = arith.subf %121, %139 : vector<16x64xf32>
      %cst_41 = arith.constant 9.99999974E-6 : f32
      %141 = vector.broadcast %cst_41 : f32 to vector<16x1xf32>
      %142 = arith.addf %138, %141 : vector<16x1xf32>
      %143 = math.rsqrt %142 : vector<16x1xf32>
      %144 = vector.broadcast %143 : vector<16x1xf32> to vector<16x64xf32>
      %145 = arith.mulf %140, %144 : vector<16x64xf32>
      %146 = vector.broadcast %124 : vector<1x64xf32> to vector<16x64xf32>
      %147 = arith.mulf %145, %146 : vector<16x64xf32>
      %148 = vector.broadcast %127 : vector<1x64xf32> to vector<16x64xf32>
      %149 = arith.addf %147, %148 : vector<16x64xf32>
      %150 = arith.truncf %149 : vector<16x64xf32> to vector<16x64xbf16>
      %151 = arith.index_cast %arg15 : i32 to index
      %c0_42 = arith.constant 0 : index
      %c0_43 = arith.constant 0 : index
      %152 = vector.load %arg10[%151, %c0_42, %c0_43] : memref<12x64x256xbf16, #tpu.memory_space<vmem>>, vector<1x64x256xbf16>
      %153 = vector.shape_cast %152 : vector<1x64x256xbf16> to vector<64x256xbf16>
      %cst_44 = arith.constant dense<0.000000e+00> : vector<16x256xf32>
      %154 = tpu.matmul %150, %153, %cst_44 {dimension_numbers = #tpu.dot_dimension_numbers<[1], [0], [0], [1], [0, 0, 1, 1], [], []>} : vector<16x64xbf16>, vector<64x256xbf16>, vector<16x256xf32> -> vector<16x256xf32>
      %155 = arith.index_cast %arg15 : i32 to index
      %c0_45 = arith.constant 0 : index
      %c0_46 = arith.constant 0 : index
      %156 = vector.load %arg11[%155, %c0_45, %c0_46] : memref<12x1x256xf32, #tpu.memory_space<vmem>>, vector<1x1x256xf32>
      %157 = vector.shape_cast %156 : vector<1x1x256xf32> to vector<1x256xf32>
      %158 = vector.broadcast %157 : vector<1x256xf32> to vector<16x256xf32>
      %159 = arith.addf %154, %158 : vector<16x256xf32>
      %cst_47 = arith.constant 5.000000e-01 : f32
      %160 = vector.broadcast %cst_47 : f32 to vector<16x256xf32>
      %161 = arith.mulf %160, %159 : vector<16x256xf32>
      %cst_48 = arith.constant 0.636619746 : f32
      %162 = math.sqrt %cst_48 : f32
      %163 = arith.mulf %159, %159 : vector<16x256xf32>
      %164 = arith.mulf %159, %163 : vector<16x256xf32>
      %cst_49 = arith.constant 4.471500e-02 : f32
      %165 = vector.broadcast %cst_49 : f32 to vector<16x256xf32>
      %166 = arith.mulf %165, %164 : vector<16x256xf32>
      %167 = arith.addf %159, %166 : vector<16x256xf32>
      %168 = vector.broadcast %162 : f32 to vector<16x256xf32>
      %169 = arith.mulf %168, %167 : vector<16x256xf32>
      %170 = math.tanh %169 : vector<16x256xf32>
      %cst_50 = arith.constant 1.000000e+00 : f32
      %171 = vector.broadcast %cst_50 : f32 to vector<16x256xf32>
      %172 = arith.addf %171, %170 : vector<16x256xf32>
      %173 = arith.mulf %161, %172 : vector<16x256xf32>
      %174 = arith.truncf %173 : vector<16x256xf32> to vector<16x256xbf16>
      %175 = arith.index_cast %arg15 : i32 to index
      %c0_51 = arith.constant 0 : index
      %c0_52 = arith.constant 0 : index
      %176 = vector.load %arg12[%175, %c0_51, %c0_52] : memref<12x256x64xbf16, #tpu.memory_space<vmem>>, vector<1x256x64xbf16>
      %177 = vector.shape_cast %176 : vector<1x256x64xbf16> to vector<256x64xbf16>
      %cst_53 = arith.constant dense<0.000000e+00> : vector<16x64xf32>
      %178 = tpu.matmul %174, %177, %cst_53 {dimension_numbers = #tpu.dot_dimension_numbers<[1], [0], [0], [1], [0, 0, 1, 1], [], []>} : vector<16x256xbf16>, vector<256x64xbf16>, vector<16x64xf32> -> vector<16x64xf32>
      %179 = arith.index_cast %arg15 : i32 to index
      %c0_54 = arith.constant 0 : index
      %c0_55 = arith.constant 0 : index
      %180 = vector.load %arg13[%179, %c0_54, %c0_55] : memref<12x1x64xf32, #tpu.memory_space<vmem>>, vector<1x1x64xf32>
      %181 = vector.shape_cast %180 : vector<1x1x64xf32> to vector<1x64xf32>
      %182 = vector.broadcast %181 : vector<1x64xf32> to vector<16x64xf32>
      %183 = arith.addf %178, %182 : vector<16x64xf32>
      %184 = arith.addf %183, %121 : vector<16x64xf32>
      scf.yield %184 : vector<16x64xf32>
    }
    %c12_i32_6 = arith.constant 12 : i32
    %19 = vector.shape_cast %18 : vector<16x64xf32> to vector<2x8x64xf32>
    %c0_7 = arith.constant 0 : index
    %c0_8 = arith.constant 0 : index
    %c0_9 = arith.constant 0 : index
    %20 = vector.load %arg14[%c0_7, %c0_8, %c0_9] : memref<2x8x64xf32, #tpu.memory_space<vmem>>, vector<2x8x64xf32>
    tpu.vector_store %arg14[%c0_7, %c0_8, %c0_9], %19 {strides = array<i32>} : memref<2x8x64xf32, #tpu.memory_space<vmem>>, vector<2x8x64xf32>,
    return
  }
}

</mosaic_0001>

<bundles_post_ra>
// kernel: gpt2_segment1_forward.1
= control target key start
LH: loop header
LB: loop body
LE: loop exit
PB: predicated region body
PF: predicated region fallthrough
CT: control target
= control target key end

     0   :  { %19 = vsyncpa [#allocation3], 0  ;;  %v49_v0 = vlaneseq  ;;  %v2171_v5 = vmov 1966171168   ;;  %s2618_s0 = inlined_call_operand.vmem [shape: f32[2,8,64], index: 0, kind: input, shape index: {}]   ;;  %s2619_s1 = inlined_call_operand.vmem [shape: f32[2,8], index: 1, kind: input, shape index: {}]   ;;  %s2620_s2 = inlined_call_operand.vmem [shape: f32[12,1,64], index: 2, kind: input, shape index: {}]   ;;  %s2621_s3 = inlined_call_operand.vmem [shape: f32[12,1,64], index: 3, kind: input, shape index: {}]   ;;  %s2622_s4 = inlined_call_operand.vmem [shape: bf16[12,64,192], index: 4, kind: input, shape index: {}]   ;;  %s2623_s5 = inlined_call_operand.vmem [shape: f32[12,1,192], index: 5, kind: input, shape index: {}]   ;;  %s2624_s6 = inlined_call_operand.vmem [shape: bf16[12,64,64], index: 6, kind: input, shape index: {}]   ;;  %s2625_s7 = inlined_call_operand.vmem [shape: f32[12,1,64], index: 7, kind: input, shape index: {}]   ;;  %s2626_s8 = inlined_call_operand.vmem [shape: f32[12,1,64], index: 8, kind: input, shape index: {}]   ;;  %s2627_s9 = inlined_call_operand.vmem [shape: f32[12,1,64], index: 9, kind: input, shape index: {}]   ;;  %s2628_s10 = inlined_call_operand.vmem [shape: bf16[12,64,256], index: 10, kind: input, shape index: {}]   ;;  %s2629_s11 = inlined_call_operand.vmem [shape: f32[12,1,256], index: 11, kind: input, shape index: {}]   ;;  %s2630_s12 = inlined_call_operand.vmem [shape: bf16[12,256,64], index: 12, kind: input, shape index: {}]   ;;  %s2631_s13 = inlined_call_operand.vmem [shape: f32[12,1,64], index: 13, kind: input, shape index: {}]   ;;  %s2632_s14 = inlined_call_operand.hbm [shape: f32[2,8,64], index: 14, kind: output, shape index: {}]  }
   0x1   :  { %v1723_v1 = vld.sshfl [vmem:[%s2619_s1] sm:$0x11 pattern:$0x75316420]  ;;  %v93_v3 = vld [vmem:[%s2618_s0 + $0x8] sm:$0xff]   ;;  %v65_v6 = vunpack.c.l.s4 %v2171_v5 }
   0x2   :  { %v92_v2 = vld [vmem:[%s2618_s0] sm:$0xff]   ;;  %v2269_v4 = vshrl.u32 %v49_v0, 7  ;;  %v63_v7 = vcombine.high %v1723_v1, %v1723_v1  ;;  %v52_v9 = vand.u32 127, %v49_v0  ;;  %s2286_s0 = smov 0  }
   0x3   :  { %v66_v8 = vunpack.c.0.s8 %v65_v6 }
   0x4   :  { %v2273_v11 = vsub.s32 0, %v2269_v4  ;;  %vm53_vm0 = vcmp.le.s32.totalorder %v52_v9, %v2269_v4 }
   0x5   :  { %v69_v10 = vsub.s32 %v66_v8, %v2269_v4 }
   0x7   :  { %v70_v12 = vrot.slane %v1723_v1, %v69_v10  ;;  %v77_v13 = vrot.slane %v63_v7, %v69_v10 }
   0x9   :  { %v83_v14 = vrot.slane %v70_v12, %v2273_v11  ;;  %v87_v15 = vrot.slane %v77_v13, %v2273_v11 }
   0xb   :  { %v2278_v16 = vsel %vm53_vm0, %v83_v14, -1e+30  ;;  %v2280_v17 = vsel %vm53_vm0, %v87_v15, -1e+30 }
   0xc LB: > { %vm106_vm1 = vcmask 523264   ;;  %s1803_s1 = sshll.u32 %s2169_s0, 6  ;;  %s1810_s25 = sshll.u32 %s2169_s0, 7  ;;  %v2172_v38 = vmov 0   ;;  %v2173_v59 = vmov 0.0   ;;  %vm2175_vm2 = vmmov 0   ;;  %s2169_s0 = sphi %s2286_s0, %s99_s0   ;;  %v2165_v2 = vphi %v92_v2, %v2634_v2   ;;  %v2161_v3 = vphi %v93_v3, %v2633_v3  }
   0xd   : > { %v107_v18 = vsel %vm106_vm1, %v2165_v2, 0.0  ;;  %v110_v19 = vsel %vm106_vm1, %v2161_v3, 0.0  ;;  %s153_s21 = scalar_lea.vmem %s2622_s4, %s1803_s1  ;;  %s2312_s24 = scalar_lea.vmem %s2628_s10, %s1803_s1  ;;  %251 = vmatprep.mubr.bf16.mxu1 %v2172_v38  ;;  %1882 = vmatprep.subr.bf16.mxu0 %v2173_v59  ;;  %vm300_vm3 = vcmask 130048   ;;  %vm811_vm4 = vcmask 1043456  }
   0xe   : > { %108 = vadd.xlane.f32.xlu0 %v107_v18  ;;  %v2031_v30 = vld [vmem:[%s153_s21 + $0x4] ss:$8 sps:$4 sm:$0xff]   ;;  %v2033_v31 = vld [vmem:[%s153_s21] ss:$8 sps:$4 sm:$0xff]   ;;  %v2034_v32 = vld [vmem:[%s153_s21 + $0x14] ss:$8 sps:$4 sm:$0xff]   ;;  %s2319_s28 = scalar_lea.vmem %s2630_s12, %s1810_s25  ;;  %s102_s15 = scalar_lea.vmem %s2620_s2, %s2169_s0  ;;  %1884 = vmatprep.mubr.msk.bf16.mxu0 %vm2175_vm2, %v2173_v59 }
   0xf   : > { %219 = vmatprep.subr.bf16.mxu1 %v2031_v30  ;;  %v2036_v33 = vld [vmem:[%s153_s21 + $0x10] ss:$8 sps:$4 sm:$0xff]   ;;  %v2037_v34 = vld [vmem:[%s153_s21 + $0x24] ss:$8 sps:$4 sm:$0xff]   ;;  %v2039_v35 = vld [vmem:[%s153_s21 + $0x20] ss:$8 sps:$4 sm:$0xff]   ;;  %s104_s18 = scalar_lea.vmem %s2621_s3, %s2169_s0 }
  0x10   : > { %220 = vmatpush1.bf16.msra.mxu1 %v2033_v31  ;;  %v2040_v36 = vld [vmem:[%s153_s21 + $0x34] ss:$8 sps:$4 sm:$0xff]   ;;  %v2042_v37 = vld [vmem:[%s153_s21 + $0x30] ss:$8 sps:$4 sm:$0xff]   ;;  %v1724_v47 = vld [vmem:[%s102_s15] ss:$0 sm:$0xff] }
  0x11   : > { %221 = vmatprep.subr.bf16.mxu1 %v2034_v32  ;;  %v1725_v51 = vld [vmem:[%s104_s18] ss:$0 sm:$0xff]  ;;  %s1728_s1 = sshll.u32 %s2169_s0, 1  ;;  %s2174_s22 = smov 112   ;;  %v172_v30 = vsub.s32 1, %v2269_v4  ;;  %vm711_vm5 = vcmask 64512  }
  0x12   : > { %111 = vadd.xlane.f32.xlu0 %v110_v19  ;;  %s163_s21 = scalar_lea.vmem %s2623_s5, %s1728_s1  ;;  %s2176_s23 = smov 80   ;;  %vm1203_vm6 = vcmask 261120   ;;  %vm1206_vm7 = vcmask 392192  }
  0x13   : > { %v2336_v56 = vld [vmem:[%s163_s21] sm:$0x3]  ;;  %s2177_s25 = smov 96   ;;  %s2178_s26 = smov 64  }
  0x14   : > { %222 = vmatpush1.bf16.msra.mxu1 %v2036_v33  ;;  %v169_v57 = vrot.slane %v2336_v56, %v2273_v11  ;;  %s1808_s27 = sshll.u32 %s2169_s0, 5  ;;  %s2179_s16 = smov 16  }
  0x15   : > { %223 = vmatprep.subr.bf16.mxu1 %v2037_v34  ;;  %v173_v34 = vrot.slane %v2336_v56, %v172_v30  ;;  %s1212_s15 = scalar_lea.vmem %s2624_s6, %s1808_s27  ;;  %s2180_s17 = smov 32  }
  0x16   : > { %s2181_s18 = smov 48   ;;  %s1221_s21 = scalar_lea.vmem %s2625_s7, %s2169_s0 }
  0x17   : > { %s1301_s27 = scalar_lea.vmem %s2627_s9, %s2169_s0 }
  0x18   : > { %224 = vmatpush1.bf16.msra.mxu1 %v2039_v35 }
  0x19   : > { %225 = vmatprep.subr.bf16.mxu1 %v2040_v36 }
  0x1c   : > { %226 = vmatpush1.bf16.msra.mxu1 %v2042_v37 }
  0x1d   : > { %1870 = vmatprep.subr.bf16.mxu1 %v2173_v59 }
  0x9b   : > { %v109_v20 = vpop.xlane.xlu0 %108 }
  0x9c   : > { %v114_v21 = vmul.f32 0.015625, %v109_v20 }
  0x9e   : > { %v116_v22 = vsub.f32 %v2165_v2, %v114_v21 }
  0x9f   : > { %v112_v23 = vpop.xlane.xlu0 %111 }
  0xa0   : > { %v115_v24 = vmul.f32 0.015625, %v112_v23  ;;  %v118_v25 = vmul.f32 %v116_v22, %v116_v22 }
  0xa2   : > { %v117_v26 = vsub.f32 %v2161_v3, %v115_v24  ;;  %v120_v27 = vsel %vm106_vm1, %v118_v25, 0.0 }
  0xa3   : > { %121 = vadd.xlane.f32.xlu1 %v120_v27 }
  0xa4   : > { %v119_v28 = vmul.f32 %v117_v26, %v117_v26 }
  0xa6   : > { %v123_v29 = vsel %vm106_vm1, %v119_v28, 0.0 }
  0xa7   : > { %124 = vadd.xlane.f32.xlu1 %v123_v29 }
 0x130   : > { %v122_v39 = vpop.xlane.xlu1 %121 }
 0x131   : > { %v126_v40 = vmul.f32 0.015625, %v122_v39 }
 0x133   : > { %v128_v41 = vadd.f32 1e-05, %v126_v40 }
 0x134   : > { %v125_v42 = vpop.xlane.xlu1 %124 }
 0x135   : > { %2075 = vrsqrt.f32 %v128_v41  ;;  %v127_v43 = vmul.f32 0.015625, %v125_v42 }
 0x137   : > { %v129_v44 = vadd.f32 1e-05, %v127_v43 }
 0x139   : > { %2077 = vrsqrt.f32 %v129_v44 }
 0x13f   : > { %v2076_v45 = vpop.eup %2075 }
 0x140   : > { %v132_v46 = vmul.f32 %v2076_v45, %v116_v22 }
 0x142   : > { %v140_v50 = vmul.f32 %v1724_v47, %v132_v46 }
 0x143   : > { %v2078_v48 = vpop.eup %2077 }
 0x144   : > { %v133_v49 = vmul.f32 %v2078_v48, %v117_v26  ;;  %v148_v53 = vadd.f32 %v1725_v51, %v140_v50 }
 0x146   : > { %v141_v52 = vmul.f32 %v1724_v47, %v133_v49 }
 0x148   : > { %v149_v54 = vadd.f32 %v1725_v51, %v141_v52 }
 0x14a   : > { %v150_v55 = vpack.c.bf16 %v149_v54, %v148_v53 }
 0x14c   : > { %1737 = vmatmul.mubr.msk.bf16.vlgmr.msra.gmra.mrb[0].mxu1 %vm106_vm1, %v150_v55 }
 0x14d   : > { %1872 = vmatprep.mubr.msk.bf16.mxu1 %vm2175_vm2, %v2173_v59 }
 0x21f   : > { %v253_v58 = vpop.f32.mrb[0].mxu1 }
 0x220   : > { %v254_v60 = vadd.f32 %v253_v58, %v169_v57  ;;  %v2342_v61 = vpop.f32.mrb[1].mxu1 }
 0x221   : > { %v257_v62 = vpop.f32.mrb[2].mxu1  ;;  %v256_v37 = vadd.f32 %v2342_v61, %v173_v34 }
 0x222   : > { %v1804_v63 = vpack.c.bf16 %v254_v60, %v254_v60  ;;  %v258_v0 = vadd.f32 %v257_v62, %v169_v57  ;;  %v2344_v1 = vpop.f32.mrb[3].mxu1 }
 0x223   : > { %v260_v40 = vadd.f32 %v2344_v1, %v173_v34  ;;  %v2399_v42 = vpack.c.bf16 %v256_v37, %v256_v37 }
 0x224   : > { %v1805_v5 = vpack.c.bf16 %v258_v0, %v258_v0  ;;  %269 = vrot.lane.b32.xlu0 %v1804_v63, %s2174_s22 }
 0x225   : > { %v2402_v43 = vpack.c.bf16 %v260_v40, %v260_v40  ;;  %v813_v44 = vsel %vm811_vm4, %v2399_v42, 0 }
 0x226   : > { %271 = vrot.lane.b32.xlu1 %v1805_v5, %s2174_s22 }
 0x227   : > { %v859_v45 = vsel %vm811_vm4, %v2402_v43, 0 }
 0x228   : > { %277 = vrot.lane.b32.xlu0 %v1804_v63, %s2176_s23 }
 0x22a   : > { %273 = vrot.lane.b32.xlu1 %v1804_v63, %s2177_s25 }
 0x22c   : > { %298 = vrot.lane.b32.xlu0 %v1804_v63, %s2178_s26 }
 0x22e   : > { %275 = vrot.lane.b32.xlu1 %v1805_v5, %s2177_s25 }
 0x232   : > { %279 = vrot.lane.b32.xlu1 %v1805_v5, %s2176_s23 }
 0x236   : > { %347 = vrot.lane.b32.xlu1 %v1805_v5, %s2178_s26 }
 0x296   : > { %v270_v6 = vpop.permute.xlu0 %269 }
 0x297   : > { %v1744_v7 = vcombine.low %v270_v6, %v270_v6 }
 0x298   : > { %v272_v8 = vpop.permute.xlu1 %271 }
 0x299   : > { %v1746_v9 = vcombine.low %v272_v8, %v272_v8  ;;  %397 = vrot.lane.b32.xlu0 %v1744_v7, %s2178_s26 }
 0x29a   : > { %v2356_v10 = vpop.permute.xlu0 %277 }
 0x29b   : > { %447 = vrot.lane.b32.xlu1 %v1746_v9, %s2178_s26  ;;  %v1752_v19 = vcombine.low %v2356_v10, %v2356_v10 }
 0x29c   : > { %v274_v12 = vpop.permute.xlu1 %273 }
 0x29d   : > { %v1748_v13 = vcombine.low %v274_v12, %v274_v12 }
 0x29e   : > { %v299_v14 = vpop.permute.xlu0 %298 }
 0x29f   : > { %v305_v15 = vsel %vm300_vm3, %v299_v14, 0  ;;  %497 = vrot.lane.b32.xlu0 %v1748_v13, %s2178_s26 }
 0x2a0   : > { %v276_v18 = vpop.permute.xlu1 %275  ;;  %1871 = vmatpush3.bf16.xpose.msra.mxu1 %v305_v15 }
 0x2a1   : > { %v1750_v20 = vcombine.low %v276_v18, %v276_v18  ;;  %1876 = vmatprep.subr.bf16.mxu1 %v2173_v59 }
 0x2a3   : > { %547 = vrot.lane.b32.xlu1 %v1750_v20, %s2178_s26  ;;  %597 = vrot.lane.b32.xlu0 %v1752_v19, %s2178_s26 }
 0x2a4   : > { %v280_v21 = vpop.permute.xlu1 %279 }
 0x2a5   : > { %v1754_v22 = vcombine.low %v280_v21, %v280_v21 }
 0x2a7   : > { %647 = vrot.lane.b32.xlu1 %v1754_v22, %s2178_s26  ;;  %1873 = vmatmul.mubr.msk.bf16.vlgmr.msra.gmra.mrb[4].mxu1 %vm300_vm3, %v1804_v63 }
 0x2a8   : > { %v348_v23 = vpop.permute.xlu1 %347  ;;  %1878 = vmatprep.mubr.msk.bf16.mxu1 %vm2175_vm2, %v2173_v59 }
 0x2a9   : > { %v353_v24 = vsel %vm300_vm3, %v348_v23, 0 }
 0x2aa   : > { %1877 = vmatpush3.bf16.xpose.msra.mxu1 %v353_v24 }
 0x2ab   : > { %1888 = vmatprep.subr.bf16.mxu1 %v2173_v59 }
 0x2b1   : > { %1879 = vmatmul.mubr.msk.bf16.vlgmr.msra.gmra.mrb[8].mxu1 %vm300_vm3, %v1805_v5 }
 0x2b2   : > { %1890 = vmatprep.mubr.msk.bf16.mxu1 %vm2175_vm2, %v2173_v59 }
 0x30b   : > { %v398_v25 = vpop.permute.xlu0 %397 }
 0x30c   : > { %v403_v26 = vsel %vm300_vm3, %v398_v25, 0 }
 0x30d   : > { %v448_v27 = vpop.permute.xlu1 %447  ;;  %1883 = vmatpush3.bf16.xpose.msra.mxu0 %v403_v26 }
 0x30e   : > { %v453_v28 = vsel %vm300_vm3, %v448_v27, 0  ;;  %1894 = vmatprep.subr.bf16.mxu0 %v2173_v59 }
 0x30f   : > { %1889 = vmatpush3.bf16.xpose.msra.mxu1 %v453_v28 }
 0x310   : > { %1900 = vmatprep.subr.bf16.mxu1 %v2173_v59 }
 0x311   : > { %v498_v29 = vpop.permute.xlu0 %497 }
 0x312   : > { %v503_v31 = vsel %vm300_vm3, %v498_v29, 0 }
 0x314   : > { %1885 = vmatmul.mubr.msk.bf16.vlgmr.msra.gmra.mrb[0].mxu0 %vm300_vm3, %v270_v6 }
 0x315   : > { %v548_v32 = vpop.permute.xlu1 %547  ;;  %1895 = vmatpush3.bf16.xpose.msra.mxu0 %v503_v31  ;;  %1896 = vmatprep.mubr.msk.bf16.mxu0 %vm2175_vm2, %v2173_v59  ;;  %v598_v35 = vpop.permute.xlu0 %597 }
 0x316   : > { %v553_v33 = vsel %vm300_vm3, %v548_v32, 0  ;;  %1891 = vmatmul.mubr.msk.bf16.vlgmr.msra.gmra.mrb[12].mxu1 %vm300_vm3, %v272_v8  ;;  %1906 = vmatprep.subr.bf16.mxu0 %v2173_v59  ;;  %v603_v39 = vsel %vm300_vm3, %v598_v35, 0 }
 0x317   : > { %1901 = vmatpush3.bf16.xpose.msra.mxu1 %v553_v33  ;;  %1902 = vmatprep.mubr.msk.bf16.mxu1 %vm2175_vm2, %v2173_v59 }
 0x318   : > { %1912 = vmatprep.subr.bf16.mxu1 %v2173_v59 }
 0x319   : > { %v648_v36 = vpop.permute.xlu1 %647 }
 0x31a   : > { %v653_v41 = vsel %vm300_vm3, %v648_v36, 0 }
 0x31c   : > { %1897 = vmatmul.mubr.msk.bf16.vlgmr.msra.gmra.mrb[4].mxu0 %vm300_vm3, %v274_v12 }
 0x31d   : > { %1907 = vmatpush3.bf16.xpose.msra.mxu0 %v603_v39  ;;  %1908 = vmatprep.mubr.msk.bf16.mxu0 %vm2175_vm2, %v2173_v59 }
 0x31e   : > { %1903 = vmatmul.mubr.msk.bf16.vlgmr.msra.gmra.mrb[16].mxu1 %vm300_vm3, %v276_v18  ;;  %1918 = vmatprep.subr.bf16.mxu0 %v2173_v59 }
 0x31f   : > { %1913 = vmatpush3.bf16.xpose.msra.mxu1 %v653_v41  ;;  %1914 = vmatprep.mubr.msk.bf16.mxu1 %vm2175_vm2, %v2173_v59 }
 0x320   : > { %1924 = vmatprep.subr.bf16.mxu1 %v2173_v59 }
 0x324   : > { %1909 = vmatmul.mubr.msk.bf16.vlgmr.msra.gmra.mrb[8].mxu0 %vm300_vm3, %v2356_v10 }
 0x325   : > { %1919 = vmatpush3.bf16.msra.mxu0 %v813_v44  ;;  %1920 = vmatprep.mubr.msk.bf16.mxu0 %vm2175_vm2, %v2173_v59 }
 0x326   : > { %1915 = vmatmul.mubr.msk.bf16.vlgmr.msra.gmra.mrb[20].mxu1 %vm300_vm3, %v280_v21  ;;  %1930 = vmatprep.subr.bf16.mxu0 %v2173_v59 }
 0x327   : > { %1925 = vmatpush3.bf16.msra.mxu1 %v859_v45  ;;  %1926 = vmatprep.mubr.msk.bf16.mxu1 %vm2175_vm2, %v2173_v59 }
 0x328   : > { %1936 = vmatprep.subr.bf16.mxu1 %v2173_v59 }
 0x37a   : > { %v341_v46 = vpop.f32.mrb[4].mxu1 }
 0x37b   : > { %v695_v47 = vmul.f32 0.25, %v341_v46  ;;  %v1874_v48 = vpop.f32.mrb[5].mxu1 }
 0x37c   : > { %v344_v49 = vpop.f32.mrb[6].mxu1 }
 0x37d   : > { %v703_v50 = vadd.f32 %v695_v47, %v2278_v16  ;;  %v1875_v51 = vpop.f32.mrb[7].mxu1 }
 0x37f   : > { %v712_v52 = vsel %vm711_vm5, %v703_v50, -inf }
 0x380   : > { %713 = vmax.xlane.f32.xlu0 %v712_v52 }
 0x384   : > { %v389_v53 = vpop.f32.mrb[8].mxu1 }
 0x385   : > { %v696_v54 = vmul.f32 0.25, %v389_v53  ;;  %v1880_v55 = vpop.f32.mrb[9].mxu1 }
 0x386   : > { %v392_v56 = vpop.f32.mrb[10].mxu1 }
 0x387   : > { %v704_v57 = vadd.f32 %v696_v54, %v2280_v17  ;;  %v1881_v58 = vpop.f32.mrb[11].mxu1 }
 0x389   : > { %v715_v60 = vsel %vm711_vm5, %v704_v57, -inf }
 0x38a   : > { %716 = vmax.xlane.f32.xlu1 %v715_v60 }
 0x3e7   : > { %v439_v61 = vpop.f32.mrb[0].mxu0 }
 0x3e8   : > { %v697_v62 = vmul.f32 0.25, %v439_v61  ;;  %v1886_v63 = vpop.f32.mrb[1].mxu0 }
 0x3e9   : > { %v442_v0 = vpop.f32.mrb[2].mxu0  ;;  %v489_v1 = vpop.f32.mrb[12].mxu1 }
 0x3ea   : > { %v705_v5 = vadd.f32 %v697_v62, %v2278_v16  ;;  %v698_v6 = vmul.f32 0.25, %v489_v1  ;;  %v1887_v7 = vpop.f32.mrb[3].mxu0  ;;  %v1892_v8 = vpop.f32.mrb[13].mxu1 }
 0x3eb   : > { %v492_v9 = vpop.f32.mrb[14].mxu1 }
 0x3ec   : > { %v706_v10 = vadd.f32 %v698_v6, %v2280_v17  ;;  %v1893_v12 = vpop.f32.mrb[15].mxu1  ;;  %v718_v13 = vsel %vm711_vm5, %v705_v5, -inf }
 0x3ed   : > { %719 = vmax.xlane.f32.xlu0 %v718_v13 }
 0x3ee   : > { %v721_v19 = vsel %vm711_vm5, %v706_v10, -inf }
 0x3ef   : > { %v539_v14 = vpop.f32.mrb[4].mxu0 }
 0x3f0   : > { %v699_v15 = vmul.f32 0.25, %v539_v14  ;;  %v1898_v18 = vpop.f32.mrb[5].mxu0 }
 0x3f1   : > { %v589_v20 = vpop.f32.mrb[16].mxu1  ;;  %722 = vmax.xlane.f32.xlu0 %v721_v19  ;;  %v542_v21 = vpop.f32.mrb[6].mxu0 }
 0x3f2   : > { %v2426_v22 = vadd.f32 %v699_v15, %v2278_v16  ;;  %v700_v23 = vmul.f32 0.25, %v589_v20  ;;  %v1899_v24 = vpop.f32.mrb[7].mxu0  ;;  %v1904_v25 = vpop.f32.mrb[17].mxu1 }
 0x3f3   : > { %v592_v26 = vpop.f32.mrb[18].mxu1 }
 0x3f4   : > { %v708_v27 = vadd.f32 %v700_v23, %v2280_v17  ;;  %v1905_v28 = vpop.f32.mrb[19].mxu1  ;;  %v724_v29 = vsel %vm711_vm5, %v2426_v22, -inf }
 0x3f5   : > { %725 = vmax.xlane.f32.xlu0 %v724_v29 }
 0x3f6   : > { %v727_v31 = vsel %vm711_vm5, %v708_v27, -inf }
 0x3f7   : > { %728 = vmax.xlane.f32.xlu1 %v727_v31  ;;  %v639_v32 = vpop.f32.mrb[8].mxu0 }
 0x3f8   : > { %v701_v33 = vmul.f32 0.25, %v639_v32  ;;  %v1910_v34 = vpop.f32.mrb[9].mxu0 }
 0x3f9   : > { %v642_v35 = vpop.f32.mrb[10].mxu0  ;;  %v689_v36 = vpop.f32.mrb[20].mxu1 }
 0x3fa   : > { %v2433_v37 = vadd.f32 %v701_v33, %v2278_v16  ;;  %v702_v39 = vmul.f32 0.25, %v689_v36  ;;  %v1911_v40 = vpop.f32.mrb[11].mxu0  ;;  %v1916_v41 = vpop.f32.mrb[21].mxu1 }
 0x3fb   : > { %v692_v44 = vpop.f32.mrb[22].mxu1 }
 0x3fc   : > { %v710_v45 = vadd.f32 %v702_v39, %v2280_v17  ;;  %v1917_v46 = vpop.f32.mrb[23].mxu1  ;;  %v730_v47 = vsel %vm711_vm5, %v2433_v37, -inf }
 0x3fd   : > { %731 = vmax.xlane.f32.xlu0 %v730_v47 }
 0x3fe   : > { %v733_v48 = vsel %vm711_vm5, %v710_v45, -inf }
 0x3ff   : > { %734 = vmax.xlane.f32.xlu1 %v733_v48 }
 0x40d   : > { %v714_v49 = vpop.xlane.xlu0 %713 }
 0x40e   : > { %v736_v51 = vsub.f32 %v703_v50, %v714_v49 }
 0x410   : > { %v744_v52 = vmul.f32 1.442695, %v736_v51 }
 0x412   : > { %2079 = vpow2.f32 %v744_v52 }
 0x417   : > { %v717_v53 = vpop.xlane.xlu1 %716 }
 0x418   : > { %v737_v54 = vsub.f32 %v704_v57, %v717_v53 }
 0x41a   : > { %v746_v55 = vmul.f32 1.442695, %v737_v54 }
 0x41c   : > { %v2080_v56 = vpop.eup %2079  ;;  %2081 = vpow2.f32 %v746_v55 }
 0x41d   : > { %v760_v58 = vsel %vm711_vm5, %v2080_v56, 0.0 }
 0x41e   : > { %761 = vadd.xlane.f32.xlu0 %v760_v58 }
 0x426   : > { %v2082_v60 = vpop.eup %2081 }
 0x427   : > { %v763_v61 = vsel %vm711_vm5, %v2082_v60, 0.0 }
 0x428   : > { %764 = vadd.xlane.f32.xlu1 %v763_v61 }
 0x439   : > { %288 = vrot.lane.b32.xlu1 %v2402_v43, %s2174_s22 }
 0x43d   : > { %290 = vrot.lane.b32.xlu1 %v2399_v42, %s2177_s25 }
 0x441   : > { %292 = vrot.lane.b32.xlu1 %v2402_v43, %s2177_s25  ;;  %s1299_s25 = scalar_lea.vmem %s2626_s8, %s2169_s0 }
 0x47a   : > { %v720_v50 = vpop.xlane.xlu0 %719 }
 0x47b   : > { %v738_v57 = vsub.f32 %v705_v5, %v720_v50 }
 0x47d   : > { %v748_v62 = vmul.f32 1.442695, %v738_v57 }
 0x47e   : > { %v723_v63 = vpop.xlane.xlu0 %722 }
 0x47f   : > { %2083 = vpow2.f32 %v748_v62  ;;  %v739_v0 = vsub.f32 %v706_v10, %v723_v63 }
 0x481   : > { %v750_v1 = vmul.f32 1.442695, %v739_v0 }
 0x482   : > { %v726_v23 = vpop.xlane.xlu0 %725 }
 0x483   : > { %2085 = vpow2.f32 %v750_v1  ;;  %v740_v25 = vsub.f32 %v2426_v22, %v726_v23 }
 0x484   : > { %v729_v6 = vpop.xlane.xlu1 %728 }
 0x485   : > { %v741_v7 = vsub.f32 %v708_v27, %v729_v6  ;;  %v752_v28 = vmul.f32 1.442695, %v740_v25 }
 0x487   : > { %v754_v8 = vmul.f32 1.442695, %v741_v7 }
 0x489   : > { %v2447_v9 = vpop.eup %2083  ;;  %2087 = vpow2.f32 %v754_v8 }
 0x48a   : > { %v766_v12 = vsel %vm711_vm5, %v2447_v9, 0.0  ;;  %v732_v24 = vpop.xlane.xlu0 %731 }
 0x48b   : > { %767 = vadd.xlane.f32.xlu0 %v766_v12  ;;  %v742_v27 = vsub.f32 %v2433_v37, %v732_v24 }
 0x48c   : > { %v735_v13 = vpop.xlane.xlu1 %734 }
 0x48d   : > { %v2451_v14 = vpop.eup %2085  ;;  %v743_v5 = vsub.f32 %v710_v45, %v735_v13  ;;  %v756_v29 = vmul.f32 1.442695, %v742_v27 }
 0x48e   : > { %v769_v15 = vsel %vm711_vm5, %v2451_v14, 0.0 }
 0x48f   : > { %v758_v10 = vmul.f32 1.442695, %v743_v5  ;;  %770 = vadd.xlane.f32.xlu1 %v769_v15 }
 0x491   : > { %2089 = vpow2.f32 %v758_v10 }
 0x493   : > { %v2455_v18 = vpop.eup %2087 }
 0x494   : > { %v775_v19 = vsel %vm711_vm5, %v2455_v18, 0.0 }
 0x495   : > { %776 = vadd.xlane.f32.xlu1 %v775_v19 }
 0x49b   : > { %v2459_v20 = vpop.eup %2089 }
 0x49c   : > { %v781_v21 = vsel %vm711_vm5, %v2459_v20, 0.0 }
 0x49d   : > { %782 = vadd.xlane.f32.xlu1 %v781_v21 }
 0x4a1   : > { %286 = vrot.lane.b32.xlu0 %v2399_v42, %s2174_s22 }
 0x4ab   : > { %v762_v26 = vpop.xlane.xlu0 %761 }
 0x4ac   : > { %2091 = vrcp.f32 %v762_v26 }
 0x4ad   : > { %2093 = vpow2.f32 %v752_v28 }
 0x4ae   : > { %296 = vrot.lane.b32.xlu1 %v2402_v43, %s2176_s23  ;;  %2095 = vpow2.f32 %v756_v29  ;;  %v2043_v29 = vld [vmem:[%s1212_s15] sm:$0xff]  }
 0x4b5   : > { %v765_v31 = vpop.xlane.xlu1 %764 }
 0x4b6   : > { %v2092_v32 = vpop.eup %2091  ;;  %2097 = vrcp.f32 %v765_v31 }
 0x4b7   : > { %v785_v33 = vmul.f32 %v2092_v32, %v2080_v56  ;;  %v2470_v35 = vpop.eup %2093 }
 0x4b8   : > { %v2474_v22 = vpop.eup %2095  ;;  %v772_v43 = vsel %vm711_vm5, %v2470_v35, 0.0 }
 0x4b9   : > { %v800_v34 = vpack.c.bf16 %v785_v33, %v785_v33  ;;  %v289_v39 = vpop.permute.xlu1 %288  ;;  %v778_v40 = vsel %vm711_vm5, %v2474_v22, 0.0 }
 0x4ba   : > { %v951_v44 = vsel %vm811_vm4, %v289_v39, 0 }
 0x4bb   : > { %1921 = vmatmul.mubr.msk.bf16.vlgmr.msra.gmra.mrb[12].mxu0 %vm711_vm5, %v800_v34 }
 0x4bc   : > { %1932 = vmatprep.mubr.msk.bf16.mxu0 %vm2175_vm2, %v2173_v59 }
 0x4bd   : > { %v291_v45 = vpop.permute.xlu1 %290 }
 0x4c0   : > { %v2098_v36 = vpop.eup %2097  ;;  %773 = vadd.xlane.f32.xlu0 %v772_v43 }
 0x4c1   : > { %v787_v37 = vmul.f32 %v2098_v36, %v2082_v60  ;;  %v293_v46 = vpop.permute.xlu1 %292 }
 0x4c2   : > { %v1043_v50 = vsel %vm811_vm4, %v293_v46, 0 }
 0x4c3   : > { %v801_v41 = vpack.c.bf16 %v787_v37, %v787_v37 }
 0x4c4   : > { %779 = vadd.xlane.f32.xlu0 %v778_v40 }
 0x4c5   : > { %1927 = vmatmul.mubr.msk.bf16.vlgmr.msra.gmra.mrb[24].mxu1 %vm711_vm5, %v801_v41 }
 0x4c6   : > { %1937 = vmatpush3.bf16.msra.mxu1 %v951_v44  ;;  %1938 = vmatprep.mubr.msk.bf16.mxu1 %vm2175_vm2, %v2173_v59 }
 0x4c7   : > { %1948 = vmatprep.subr.bf16.mxu1 %v2173_v59 }
 0x4da   : > { %294 = vrot.lane.b32.xlu0 %v2399_v42, %s2176_s23  ;;  %v997_v42 = vsel %vm811_vm4, %v291_v45, 0 }
 0x518   : > { %v768_v47 = vpop.xlane.xlu0 %767 }
 0x519   : > { %2099 = vrcp.f32 %v768_v47 }
 0x51c   : > { %v771_v48 = vpop.xlane.xlu1 %770  ;;  %v287_v49 = vpop.permute.xlu0 %286 }
 0x51d   : > { %2101 = vrcp.f32 %v771_v48  ;;  %v905_v51 = vsel %vm811_vm4, %v287_v49, 0  ;;  %v2044_v49 = vld [vmem:[%s1212_s15 + $0x8] sm:$0xff]  }
 0x51e   : > { %1931 = vmatpush3.bf16.msra.mxu0 %v905_v51  ;;  %v2045_v51 = vld [vmem:[%s1212_s15 + $0x10] sm:$0xff]  }
 0x51f   : > { %1942 = vmatprep.subr.bf16.mxu0 %v2173_v59 }
 0x522   : > { %v777_v52 = vpop.xlane.xlu1 %776 }
 0x523   : > { %v2100_v53 = vpop.eup %2099  ;;  %2103 = vrcp.f32 %v777_v52  ;;  %v2046_v52 = vld [vmem:[%s1212_s15 + $0x18] sm:$0xff]   ;;  %s1356_s15 = scalar_lea.vmem %s2629_s11, %s1728_s1 }
 0x524   : > { %v789_v54 = vmul.f32 %v2100_v53, %v2447_v9 }
 0x526   : > { %v802_v55 = vpack.c.bf16 %v789_v54, %v789_v54 }
 0x527   : > { %v2102_v56 = vpop.eup %2101 }
 0x528   : > { %v791_v58 = vmul.f32 %v2102_v56, %v2451_v14  ;;  %1933 = vmatmul.mubr.msk.bf16.vlgmr.msra.gmra.mrb[16].mxu0 %vm711_vm5, %v802_v55 }
 0x529   : > { %1943 = vmatpush3.bf16.msra.mxu0 %v997_v42  ;;  %1944 = vmatprep.mubr.msk.bf16.mxu0 %vm2175_vm2, %v2173_v59 }
 0x52a   : > { %v783_v60 = vpop.xlane.xlu1 %782  ;;  %v803_v61 = vpack.c.bf16 %v791_v58, %v791_v58  ;;  %1954 = vmatprep.subr.bf16.mxu0 %v2173_v59 }
 0x52b   : > { %2105 = vrcp.f32 %v783_v60 }
 0x52c   : > { %1939 = vmatmul.mubr.msk.bf16.vlgmr.msra.gmra.mrb[28].mxu1 %vm711_vm5, %v803_v61 }
 0x52d   : > { %v2104_v57 = vpop.eup %2103  ;;  %1949 = vmatpush3.bf16.msra.mxu1 %v1043_v50  ;;  %1950 = vmatprep.mubr.msk.bf16.mxu1 %vm2175_vm2, %v2173_v59 }
 0x52e   : > { %v795_v62 = vmul.f32 %v2104_v57, %v2455_v18  ;;  %1960 = vmatprep.subr.bf16.mxu1 %v2173_v59  ;;  %v297_v63 = vpop.permute.xlu1 %296 }
 0x52f   : > { %v1135_v1 = vsel %vm811_vm4, %v297_v63, 0 }
 0x530   : > { %v805_v0 = vpack.c.bf16 %v795_v62, %v795_v62 }
 0x534   : > { %1951 = vmatmul.mubr.msk.bf16.vlgmr.msra.gmra.mrb[32].mxu1 %vm711_vm5, %v805_v0 }
 0x535   : > { %v2106_v6 = vpop.eup %2105  ;;  %1961 = vmatpush3.bf16.msra.mxu1 %v1135_v1  ;;  %1962 = vmatprep.mubr.msk.bf16.mxu1 %vm2175_vm2, %v2173_v59 }
 0x536   : > { %v799_v7 = vmul.f32 %v2106_v6, %v2459_v20 }
 0x538   : > { %v807_v8 = vpack.c.bf16 %v799_v7, %v799_v7 }
 0x53c   : > { %1963 = vmatmul.mubr.msk.bf16.vlgmr.msra.gmra.mrb[36].mxu1 %vm711_vm5, %v807_v8 }
 0x53d   : > { %1444 = vmatprep.mubr.bf16.mxu1 %v2172_v38 }
 0x54d   : > { %v774_v9 = vpop.xlane.xlu0 %773 }
 0x54e   : > { %2107 = vrcp.f32 %v774_v9 }
 0x551   : > { %v780_v12 = vpop.xlane.xlu0 %779 }
 0x552   : > { %2109 = vrcp.f32 %v780_v12 }
 0x555   : > { %v295_v5 = vpop.permute.xlu0 %294 }
 0x556   : > { %v1089_v18 = vsel %vm811_vm4, %v295_v5, 0 }
 0x558   : > { %v2108_v13 = vpop.eup %2107 }
 0x559   : > { %v793_v14 = vmul.f32 %v2108_v13, %v2470_v35 }
 0x55b   : > { %v804_v15 = vpack.c.bf16 %v793_v14, %v793_v14 }
 0x55c   : > { %v2110_v10 = vpop.eup %2109 }
 0x55d   : > { %1945 = vmatmul.mubr.msk.bf16.vlgmr.msra.gmra.mrb[20].mxu0 %vm711_vm5, %v804_v15  ;;  %v797_v38 = vmul.f32 %v2110_v10, %v2474_v22 }
 0x55e   : > { %1955 = vmatpush3.bf16.msra.mxu0 %v1089_v18  ;;  %1956 = vmatprep.mubr.msk.bf16.mxu0 %vm2175_vm2, %v2173_v59 }
 0x55f   : > { %1966 = vmatprep.subr.bf16.mxu0 %v2173_v59  ;;  %v806_v19 = vpack.c.bf16 %v797_v38, %v797_v38  ;;  %v1766_v38 = vld [vmem:[%s1221_s21] ss:$0 sm:$0xff] }
 0x565   : > { %1957 = vmatmul.mubr.msk.bf16.vlgmr.msra.gmra.mrb[24].mxu0 %vm711_vm5, %v806_v19 }
 0x566   : > { %1974 = vmatprep.mubr.msk.bf16.mxu0 %vm2175_vm2, %v2173_v59  ;;  %1967 = vmatpush3.bf16.msra.mxu0 %v2043_v29 }
 0x567   : > { %1968 = vmatprep.subr.bf16.mxu0 %v2173_v59 }
 0x56a   : > { %1969 = vmatpush3.bf16.msra.mxu0 %v2044_v49 }
 0x56b   : > { %1970 = vmatprep.subr.bf16.mxu0 %v2173_v59 }
 0x56e   : > { %1971 = vmatpush3.bf16.msra.mxu0 %v2045_v51 }
 0x56f   : > { %1972 = vmatprep.subr.bf16.mxu0 %v2173_v59 }
 0x572   : > { %1973 = vmatpush3.bf16.msra.mxu0 %v2046_v52 }
 0x58e   : > { %v2519_v20 = vpop.f32.mrb[12].mxu0 }
 0x58f   : > { %v1922_v21 = vpop.f32.mrb[13].mxu0 }
 0x590   : > { %v852_v23 = vpop.f32.mrb[14].mxu0 }
 0x591   : > { %v1923_v24 = vpop.f32.mrb[15].mxu0 }
 0x598   : > { %v895_v25 = vpop.f32.mrb[24].mxu1 }
 0x599   : > { %v1928_v26 = vpop.f32.mrb[25].mxu1 }
 0x59a   : > { %v898_v27 = vpop.f32.mrb[26].mxu1 }
 0x59b   : > { %v1929_v28 = vpop.f32.mrb[27].mxu1 }
 0x5fb   : > { %v941_v31 = vpop.f32.mrb[16].mxu0 }
 0x5fc   : > { %v1934_v32 = vpop.f32.mrb[17].mxu0 }
 0x5fd   : > { %v944_v33 = vpop.f32.mrb[18].mxu0 }
 0x5fe   : > { %v1935_v34 = vpop.f32.mrb[19].mxu0 }
 0x5ff   : > { %v987_v35 = vpop.f32.mrb[28].mxu1 }
 0x600   : > { %v2016_v22 = vpack.i.bf16 %v987_v35, %v941_v31  ;;  %v1940_v43 = vpop.f32.mrb[29].mxu1 }
 0x601   : > { %v990_v36 = vpop.f32.mrb[30].mxu1 }
 0x602   : > { %v1941_v37 = vpop.f32.mrb[31].mxu1  ;;  %2017 = vrot.lane.b32.xlu0 %v2016_v22, %s2179_s16  ;;  %s1528_s16 = scalar_lea.vmem %s2631_s13, %s2169_s0  ;;  %s99_s0 = sadd.s32 1, %s2169_s0  }
 0x603   : > { %v2049_v37 = vld [vmem:[%s2312_s24 + $0x4] ss:$8 sps:$4 sm:$0xff]   ;;  %p96_p0 = scmp.ge.s32.totalorder %s99_s0, 12  }
 0x604   : > { %1412 = vmatprep.subr.bf16.mxu1 %v2049_v37 }
 0x607   : > { %v1079_v39 = vpop.f32.mrb[32].mxu1 }
 0x608   : > { %v1952_v40 = vpop.f32.mrb[33].mxu1 }
 0x609   : > { %v1082_v41 = vpop.f32.mrb[34].mxu1  ;;  %v2052_v40 = vld [vmem:[%s2312_s24 + $0x14] ss:$8 sps:$4 sm:$0xff]  }
 0x60a   : > { %v1953_v44 = vpop.f32.mrb[35].mxu1  ;;  %v2050_v41 = vld [vmem:[%s2312_s24 + $0x10] ss:$8 sps:$4 sm:$0xff]  }
 0x60b   : > { %v2055_v44 = vld [vmem:[%s2312_s24 + $0x24] ss:$8 sps:$4 sm:$0xff]  }
 0x60f   : > { %v1171_v45 = vpop.f32.mrb[36].mxu1 }
 0x610   : > { %v1964_v46 = vpop.f32.mrb[37].mxu1 }
 0x611   : > { %v1174_v47 = vpop.f32.mrb[38].mxu1  ;;  %v2056_v46 = vld [vmem:[%s2312_s24 + $0x30] ss:$8 sps:$4 sm:$0xff]  }
 0x612   : > { %v1965_v48 = vpop.f32.mrb[39].mxu1  ;;  %v2058_v47 = vld [vmem:[%s2312_s24 + $0x34] ss:$8 sps:$4 sm:$0xff]  }
 0x630   : > { %v1033_v53 = vpop.f32.mrb[20].mxu0 }
 0x631   : > { %v2021_v54 = vpack.i.bf16 %v1079_v39, %v1033_v53  ;;  %v1946_v55 = vpop.f32.mrb[21].mxu0  ;;  %v2047_v39 = vld [vmem:[%s2312_s24] ss:$8 sps:$4 sm:$0xff]  }
 0x632   : > { %v1036_v56 = vpop.f32.mrb[22].mxu0  ;;  %1413 = vmatpush1.bf16.msra.mxu1 %v2047_v39 }
 0x633   : > { %2022 = vrot.lane.b32.xlu1 %v2021_v54, %s2180_s17  ;;  %v1947_v42 = vpop.f32.mrb[23].mxu0  ;;  %1414 = vmatprep.subr.bf16.mxu1 %v2052_v40  ;;  %s2182_s17 = smov (%p96_p0), [#allocation2]  }
 0x634   : > { %v1772_v42 = vld [vmem:[%s1299_s25] ss:$0 sm:$0xff] }
 0x636   : > { %1415 = vmatpush1.bf16.msra.mxu1 %v2050_v41 }
 0x637   : > { %1416 = vmatprep.subr.bf16.mxu1 %v2055_v44 }
 0x638   : > { %v1125_v58 = vpop.f32.mrb[24].mxu0 }
 0x639   : > { %v2026_v60 = vpack.i.bf16 %v1171_v45, %v1125_v58  ;;  %v1958_v61 = vpop.f32.mrb[25].mxu0  ;;  %v2053_v45 = vld [vmem:[%s2312_s24 + $0x20] ss:$8 sps:$4 sm:$0xff]  }
 0x63a   : > { %v1128_v50 = vpop.f32.mrb[26].mxu0  ;;  %1417 = vmatpush1.bf16.msra.mxu1 %v2053_v45 }
 0x63b   : > { %2027 = vrot.lane.b32.xlu0 %v2026_v60, %s2181_s18  ;;  %v1959_v57 = vpop.f32.mrb[27].mxu0  ;;  %1418 = vmatprep.subr.bf16.mxu1 %v2058_v47  ;;  %v1773_v50 = vld [vmem:[%s1301_s27] ss:$0 sm:$0xff]  ;;  %s1683_s18 = sshll.u32 (%p96_p0), %s2182_s17, 4  ;;  %s1684_s18 = int_to_ptr.vmem [resolvable:$true] %s1683_s18 }
 0x63c   :  { %s2123_s19 = scalar_lea.vmem (%p96_p0), %s1684_s18, 256  ;;  %p2128_p2 = scmp.lt.s32.totalorder (%p96_p0), %s1684_s18, %s1684_s18 }
 0x63d   :  { %p2124_p1 = scmp.ne.s32.totalorder (%p96_p0), %s1684_s18, %s2123_s19  ;;  %p2129_p3 = scmp.lt.s32.totalorder (%p96_p0), %s2123_s19, %s2123_s19 }
 0x63e   : > { %1419 = vmatpush1.bf16.msra.mxu1 %v2056_v46 }
 0x63f   :  { %p2130_p4 = por (%p96_p0), %p2129_p3, %p2128_p2 }
 0x641   :  { %p2131_p5 = pnand (%p96_p0), %p2130_p4, %p2124_p1 }
 0x674   : > { %v2018_v62 = vpop.permute.xlu0 %2017 }
 0x675   : > { %v2020_v0 = vunpack.i.h.bf16 %v2018_v62  ;;  %v2019_v59 = vunpack.i.l.bf16 %v2018_v62 }
 0x677   : > { %v1202_v8 = vsel %vm300_vm3, %v895_v25, %v2020_v0  ;;  %v1201_v9 = vsel %vm300_vm3, %v2519_v20, %v2019_v59  ;;  %v2059_v59 = vld [vmem:[%s2319_s28 + $0x40] sm:$0xff]  }
 0x678   : > { %1848 = vmatprep.subr.bf16.mxu0 %v2059_v59 }
 0x6a5   : > { %v2023_v63 = vpop.permute.xlu1 %2022 }
 0x6a6   : > { %v2025_v1 = vunpack.i.h.bf16 %v2023_v63  ;;  %v2024_v6 = vunpack.i.l.bf16 %v2023_v63 }
 0x6a8   : > { %v1204_v14 = vsel %vm1203_vm6, %v1201_v9, %v2024_v6  ;;  %v1205_v5 = vsel %vm1203_vm6, %v1202_v8, %v2025_v1  ;;  %v2060_v1 = vld [vmem:[%s2319_s28] sm:$0xff]   ;;  %v2061_v6 = vld [vmem:[%s2319_s28 + $0x48] sm:$0xff]   ;;  %v2063_v8 = vld [vmem:[%s2319_s28 + $0x50] sm:$0xff]  }
 0x6a9   : > { %v2064_v9 = vld [vmem:[%s2319_s28 + $0x10] sm:$0xff]  }
 0x6ad   : > { %v2028_v7 = vpop.permute.xlu0 %2027 }
 0x6ae   : > { %v2030_v12 = vunpack.i.h.bf16 %v2028_v7  ;;  %v2029_v13 = vunpack.i.l.bf16 %v2028_v7  ;;  %v2062_v7 = vld [vmem:[%s2319_s28 + $0x8] sm:$0xff]  }
 0x6b0   : > { %v1207_v15 = vsel %vm1206_vm7, %v1204_v14, %v2029_v13  ;;  %v1208_v10 = vsel %vm1206_vm7, %v1205_v5, %v2030_v12  ;;  %v2065_v12 = vld [vmem:[%s2319_s28 + $0x58] sm:$0xff]   ;;  %v2067_v14 = vld [vmem:[%s2319_s28 + $0x60] sm:$0xff]  }
 0x6b1   : > { %v1209_v18 = vpack.c.bf16 %v1208_v10, %v1207_v15  ;;  %v2066_v13 = vld [vmem:[%s2319_s28 + $0x18] sm:$0xff]   ;;  %v2068_v5 = vld [vmem:[%s2319_s28 + $0x20] sm:$0xff]   ;;  %v2069_v15 = vld [vmem:[%s2319_s28 + $0x68] sm:$0xff]  }
 0x6b2   : > { %v2070_v10 = vld [vmem:[%s2319_s28 + $0x28] sm:$0xff]  }
 0x6b3   : > { %1975 = vmatmul.mubr.msk.bf16.vlgmr.msra.gmra.mrb[28].mxu0 %vm106_vm1, %v1209_v18  ;;  %v2071_v18 = vld [vmem:[%s2319_s28 + $0x70] sm:$0xff]  }
 0x6b4   : > { %1849 = vmatpush3.bf16.msra.mxu0 %v2060_v1 }
 0x6b5   : > { %1850 = vmatprep.subr.bf16.mxu0 %v2061_v6 }
 0x6b8   : > { %1851 = vmatpush3.bf16.msra.mxu0 %v2062_v7 }
 0x6b9   : > { %1852 = vmatprep.subr.bf16.mxu0 %v2063_v8 }
 0x6bc   : > { %1853 = vmatpush3.bf16.msra.mxu0 %v2064_v9 }
 0x6bd   : > { %1854 = vmatprep.subr.bf16.mxu0 %v2065_v12 }
 0x6c0   : > { %1855 = vmatpush3.bf16.msra.mxu0 %v2066_v13 }
 0x6c1   : > { %1856 = vmatprep.subr.bf16.mxu0 %v2067_v14  ;;  %v1786_v14 = vld [vmem:[%s1528_s16] ss:$0 sm:$0xff] }
 0x6c4   : > { %1857 = vmatpush3.bf16.msra.mxu0 %v2068_v5 }
 0x6c5   : > { %1858 = vmatprep.subr.bf16.mxu0 %v2069_v15 }
 0x6c8   : > { %1859 = vmatpush3.bf16.msra.mxu0 %v2070_v10 }
 0x6c9   : > { %1860 = vmatprep.subr.bf16.mxu0 %v2071_v18 }
 0x786   : > { %v1290_v19 = vpop.f32.mrb[28].mxu0 }
 0x787   : > { %v1291_v21 = vadd.f32 %v1766_v38, %v1290_v19  ;;  %v1976_v23 = vpop.f32.mrb[29].mxu0  ;;  %v2073_v19 = vld [vmem:[%s2319_s28 + $0x78] sm:$0xff]  }
 0x788   : > { %v1293_v24 = vpop.f32.mrb[30].mxu0  ;;  %v1357_v23 = vld [vmem:[%s1356_s15] sm:$0x3] }
 0x789   : > { %v2537_v20 = vadd.f32 %v2165_v2, %v1291_v21  ;;  %v1294_v25 = vadd.f32 %v1766_v38, %v1293_v24  ;;  %v1977_v26 = vpop.f32.mrb[31].mxu0  ;;  %v2072_v38 = vld [vmem:[%s2319_s28 + $0x30] sm:$0xff]   ;;  %v2074_v21 = vld [vmem:[%s2319_s28 + $0x38] sm:$0xff]   ;;  %v1362_v24 = vrot.slane %v1357_v23, %v2273_v11 }
 0x78a   : > { %1861 = vmatpush3.bf16.msra.mxu0 %v2072_v38 }
 0x78b   : > { %v2540_v27 = vadd.f32 %v2161_v3, %v1294_v25  ;;  %v1303_v28 = vsel %vm106_vm1, %v2537_v20, 0.0  ;;  %1862 = vmatprep.subr.bf16.mxu0 %v2073_v19  ;;  %v1366_v25 = vrot.slane %v1357_v23, %v172_v30 }
 0x78c   : > { %1304 = vadd.xlane.f32.xlu1 %v1303_v28 }
 0x78d   : > { %v1306_v29 = vsel %vm106_vm1, %v2540_v27, 0.0 }
 0x78e   : > { %1307 = vadd.xlane.f32.xlu0 %v1306_v29  ;;  %1863 = vmatpush3.bf16.msra.mxu0 %v2074_v21 }
 0x819   : > { %v1305_v31 = vpop.xlane.xlu1 %1304 }
 0x81a   : > { %v1309_v32 = vmul.f32 0.015625, %v1305_v31 }
 0x81b   : > { %v1308_v2 = vpop.xlane.xlu0 %1307 }
 0x81c   : > { %v1311_v33 = vsub.f32 %v2537_v20, %v1309_v32  ;;  %v1310_v34 = vmul.f32 0.015625, %v1308_v2 }
 0x81e   : > { %v1312_v3 = vsub.f32 %v2540_v27, %v1310_v34  ;;  %v1313_v35 = vmul.f32 %v1311_v33, %v1311_v33 }
 0x820   : > { %v1315_v22 = vsel %vm106_vm1, %v1313_v35, 0.0  ;;  %v1314_v43 = vmul.f32 %v1312_v3, %v1312_v3 }
 0x821   : > { %1316 = vadd.xlane.f32.xlu0 %v1315_v22 }
 0x822   : > { %v1318_v36 = vsel %vm106_vm1, %v1314_v43, 0.0 }
 0x825   : > { %1319 = vadd.xlane.f32.xlu0 %v1318_v36 }
 0x8ae   : > { %v1317_v48 = vpop.xlane.xlu0 %1316 }
 0x8af   : > { %v1321_v49 = vmul.f32 0.015625, %v1317_v48 }
 0x8b1   : > { %v1323_v51 = vadd.f32 1e-05, %v1321_v49 }
 0x8b2   : > { %v1320_v52 = vpop.xlane.xlu0 %1319 }
 0x8b3   : > { %2111 = vrsqrt.f32 %v1323_v51  ;;  %v1322_v53 = vmul.f32 0.015625, %v1320_v52 }
 0x8b5   : > { %v1324_v54 = vadd.f32 1e-05, %v1322_v53 }
 0x8b7   : > { %2113 = vrsqrt.f32 %v1324_v54 }
 0x8bd   : > { %v2112_v55 = vpop.eup %2111 }
 0x8be   : > { %v1327_v56 = vmul.f32 %v2112_v55, %v1311_v33 }
 0x8c0   : > { %v1335_v60 = vmul.f32 %v1772_v42, %v1327_v56 }
 0x8c1   : > { %v2114_v58 = vpop.eup %2113 }
 0x8c2   : > { %v1328_v61 = vmul.f32 %v2114_v58, %v1312_v3  ;;  %v1343_v62 = vadd.f32 %v1773_v50, %v1335_v60 }
 0x8c4   : > { %v1336_v57 = vmul.f32 %v1772_v42, %v1328_v61 }
 0x8c6   : > { %v1344_v63 = vadd.f32 %v1773_v50, %v1336_v57 }
 0x8c8   : > { %v1345_v0 = vpack.c.bf16 %v1344_v63, %v1343_v62 }
 0x8ca   : > { %1783 = vmatmul.mubr.msk.bf16.vlgmr.msra.gmra.mrb[40].mxu1 %vm106_vm1, %v1345_v0 }
 0x99d   : > { %v1446_v26 = vpop.f32.mrb[40].mxu1 }
 0x99e   : > { %v1447_v28 = vadd.f32 %v1446_v26, %v1362_v24  ;;  %v1448_v29 = vpop.f32.mrb[41].mxu1 }
 0x99f   : > { %v1449_v31 = vadd.f32 %v1448_v29, %v1366_v25  ;;  %v1450_v32 = vpop.f32.mrb[42].mxu1 }
 0x9a0   : > { %v1459_v2 = vmul.f32 %v1447_v28, %v1447_v28  ;;  %v1451_v33 = vadd.f32 %v1450_v32, %v1362_v24  ;;  %v1452_v34 = vpop.f32.mrb[43].mxu1  ;;  %v1455_v50 = vmul.f32 0.5, %v1447_v28 }
 0x9a1   : > { %v1460_v3 = vmul.f32 %v1449_v31, %v1449_v31  ;;  %v1453_v35 = vadd.f32 %v1452_v34, %v1366_v25  ;;  %v1456_v63 = vmul.f32 0.5, %v1449_v31 }
 0x9a2   : > { %v1463_v22 = vmul.f32 %v1459_v2, %v1447_v28  ;;  %v1461_v43 = vmul.f32 %v1451_v33, %v1451_v33  ;;  %v1457_v57 = vmul.f32 0.5, %v1451_v33 }
 0x9a3   : > { %v1464_v36 = vmul.f32 %v1460_v3, %v1449_v31  ;;  %v1462_v37 = vmul.f32 %v1453_v35, %v1453_v35  ;;  %v1458_v0 = vmul.f32 0.5, %v1453_v35 }
 0x9a4   : > { %v1467_v39 = vmul.f32 0.044715, %v1463_v22  ;;  %v1465_v40 = vmul.f32 %v1461_v43, %v1451_v33 }
 0x9a5   : > { %v1468_v41 = vmul.f32 0.044715, %v1464_v36  ;;  %v1466_v44 = vmul.f32 %v1462_v37, %v1453_v35 }
 0x9a6   : > { %v1471_v45 = vadd.f32 %v1467_v39, %v1447_v28  ;;  %v1469_v30 = vmul.f32 0.044715, %v1465_v40 }
 0x9a7   : > { %v1472_v46 = vadd.f32 %v1468_v41, %v1449_v31  ;;  %v1470_v47 = vmul.f32 0.044715, %v1466_v44 }
 0x9a8   : > { %v1475_v48 = vmul.f32 0.7978845, %v1471_v45  ;;  %v1473_v49 = vadd.f32 %v1469_v30, %v1451_v33 }
 0x9a9   : > { %v1476_v51 = vmul.f32 0.7978845, %v1472_v46  ;;  %v1474_v52 = vadd.f32 %v1470_v47, %v1453_v35 }
 0x9aa   : > { %2115 = vtanh.f32 %v1475_v48  ;;  %v1477_v53 = vmul.f32 0.7978845, %v1473_v49 }
 0x9ab   : > { %2117 = vtanh.f32 %v1476_v51  ;;  %v1478_v54 = vmul.f32 0.7978845, %v1474_v52 }
 0x9ac   : > { %2119 = vtanh.f32 %v1477_v53 }
 0x9ad   : > { %2121 = vtanh.f32 %v1478_v54 }
 0x9b4   : > { %v2116_v55 = vpop.eup %2115 }
 0x9b5   : > { %v2118_v56 = vpop.eup %2117  ;;  %v1483_v42 = vadd.f32 1.0, %v2116_v55 }
 0x9b6   : > { %v2120_v58 = vpop.eup %2119  ;;  %v1484_v60 = vadd.f32 1.0, %v2118_v56 }
 0x9b7   : > { %v2122_v61 = vpop.eup %2121  ;;  %v1485_v62 = vadd.f32 1.0, %v2120_v58  ;;  %v1487_v1 = vmul.f32 %v1483_v42, %v1455_v50 }
 0x9b8   : > { %v1486_v59 = vadd.f32 1.0, %v2122_v61  ;;  %v1488_v7 = vmul.f32 %v1484_v60, %v1456_v63 }
 0x9b9   : > { %v1489_v6 = vmul.f32 %v1485_v62, %v1457_v57 }
 0x9ba   : > { %v1490_v8 = vmul.f32 %v1486_v59, %v1458_v0 }
 0x9bb   : > { %v1491_v9 = vpack.c.bf16 %v1489_v6, %v1487_v1 }
 0x9bc   : > { %v1492_v12 = vpack.c.bf16 %v1490_v8, %v1488_v7 }
 0x9be   : > { %1664 = vmatprep.mubr.bf16.mxu0 %v1492_v12 }
 0x9bf   : > { %1665 = vmatmul.mubr.bf16.vlgmr.msra.gmra.mrb[32].mxu0 %v1491_v9 }
 0xa92   : > { %v1864_v13 = vpop.f32.mrb[32].mxu0 }
 0xa93   : > { %v1865_v5 = vpop.f32.mrb[33].mxu0 }
 0xa94   : > { %v1866_v15 = vadd.f32 %v1865_v5, %v1864_v13  ;;  %v1867_v10 = vpop.f32.mrb[34].mxu0 }
 0xa95   : > { %v1868_v18 = vpop.f32.mrb[35].mxu0 }
 0xa96   : > { %v1667_v38 = vadd.f32 %v1866_v15, %v1786_v14  ;;  %v1869_v19 = vadd.f32 %v1868_v18, %v1867_v10  ;;  %98 = sbr.rel (!%p96_p0) target bundleno = 12 (0xc), region = 95 }
 0xa98   : > { %v1673_v21 = vadd.f32 %v1667_v38, %v2537_v20   ;;  %v1670_v23 = vadd.f32 %v1869_v19, %v1786_v14 }
 0xa9a   : > { %v1674_v24 = vadd.f32 %v1670_v23, %v2540_v27   ;;  %v2634_v2 = vmov %v1673_v21  ;;  %1676 = vst.msk [vmem:[#allocation2] sm:$0xff] (%p96_p0), %vm106_vm1, %v1673_v21 }
 0xa9c   : > { %v2633_v3 = vmov %v1674_v24  ;;  %1677 = vst.msk [vmem:[#allocation2 + $0x8] sm:$0xff] (%p96_p0), %vm106_vm1, %v1674_v24 }
 0xa9d   :  { %2134 = shalt.err (!%p2131_p5)
}
 0xa9e   :  { %s2135_s22 = scalar_lea.hbm %s2632_s14, 256 }
 0xa9f   :  { %p2136_p6 = scmp.ne.s32.totalorder %s2632_s14, %s2135_s22  ;;  %p2139_p7 = scmp.lt.u32.totalorder %s2135_s22, %s2632_s14 }
 0xaa1   :  { %p2141_p8 = pnand %p2139_p7, %p2136_p6 }
 0xaa3   :  { %2144 = shalt.err (!%p2141_p8)
}
 0xaa4   :  { %s2183_s4 = smov 128   ;;  %s2184_s5 = smov 8  }
 0xaa5   :  { %1689 = dma.vmem_to_hbm [thread:$0]  %s1684_s18, 256, %s2632_s14, [#allocation3], %s2183_s4, %s2183_s4, %s2184_s5  }
 0xaa6   :  { %2157 = dma.done.wait [#allocation3], 256  }
 0xaa7   :  { %2158 = vsyncadd [#allocation3], 4294967040 }
 0xaa8   :  { %1693 = vsyncpa [#allocation3], 1 }

</bundles_post_ra>
